<compile_context>
chip_gen: v7x
topology: tpu7x:2x2x1
jax: 0.10.0
libtpu: 0.0.40
codegen_flags: <defaults>
</compile_context>

<pallas_src>
import functools

import jax
import jax.numpy as jnp
from jax.experimental import pallas as pl
from jax.experimental.pallas import tpu as pltpu


def _smooth_loss_kernel(dec_ref, gt_ref, out_ref, *, alpha, beta):
    """One (k, H, W) block = k whole images.  Emits one partial-sum tile."""
    dec = dec_ref[...].astype(jnp.float32)          # (k, H, W)
    gt = gt_ref[...].astype(jnp.float32)
    _, h, w = dec.shape

    diff = dec - gt
    acc = diff * diff                               # MSELoss(reduction='sum') term

    # ---- axis-1 smoothness: |x[b, i, :] - x[b, i+1, :]| -------------------
    if h > 1:
        # jnp.roll semantics: nbr[:, i, :] = dec[:, (i+1) % h, :]
        nbr = pltpu.roll(dec, shift=h - 1, axis=1)
        row = jax.lax.broadcasted_iota(jnp.int32, dec.shape, 1)
        dh = jnp.where(row < h - 1, jnp.abs(dec - nbr), 0.0)
        if beta != 1.0:
            dh = dh * jnp.float32(beta)
        acc = acc + dh

    # ---- axis-2 smoothness: |x[..., j] - x[..., j+1]| ----------------------
    if w > 1:
        nbr = pltpu.roll(dec, shift=w - 1, axis=2)
        col = jax.lax.broadcasted_iota(jnp.int32, dec.shape, 2)
        dw = jnp.where(col < w - 1, jnp.abs(dec - nbr), 0.0)
        scale = alpha * beta
        if scale != 1.0:
            dw = dw * jnp.float32(scale)
        acc = acc + dw

    # One fused reduction; splat this block's partial sum into its (1, 8, 128) tile.
    out_ref[...] = jnp.full(out_ref.shape, jnp.sum(acc), dtype=jnp.float32)


def _vmem_capacity_bytes() -> int:
    try:
        return int(pltpu.get_tpu_info().vmem_capacity_bytes)
    except Exception:
        return 64 << 20        # conservative (v7x per-TC) fallback


def smooth_loss(decoded: jax.Array, gt: jax.Array, alpha: float = 1.0,
                beta: float = 1.0, *, target_block_bytes: int = 4 << 20) -> jax.Array:
    """Pallas TPU implementation of SmoothLoss.forward.  Returns a scalar float32."""
    assert decoded.shape == gt.shape and decoded.ndim == 3
    batch, h, w = decoded.shape
    itemsize = jnp.dtype(decoded.dtype).itemsize

    # Generation-aware scoped-VMEM cap (~72% of physical per-core VMEM).
    vmem_cap_limit = int(_vmem_capacity_bytes() * 0.72)

    # --- choose k = whole images per block ----------------------------------
    bytes_per_image_in = h * w * itemsize
    bytes_per_image_f32 = h * w * 4
    # VMEM need per block ~ 2 inputs x 2 pipeline buffers + ~6 f32-sized temporaries.
    per_image_need = 4 * bytes_per_image_in + 6 * bytes_per_image_f32
    k_vmem = max(1, (vmem_cap_limit - (2 << 20)) // per_image_need)
    k_target = max(1, int(target_block_bytes) // max(1, bytes_per_image_in))
    k_max = min(batch, k_vmem, k_target)
    if batch >= 2:
        k_max = min(k_max, -(-batch // 2))   # keep n_blocks >= 2 for dual-TC chips
    k = 1
    for cand in range(k_max, 0, -1):         # largest divisor of batch -> no padding
        if batch % cand == 0:
            k = cand
            break
    n_blocks = batch // k

    block_in_bytes = k * bytes_per_image_in
    block_f32_bytes = k * bytes_per_image_f32
    need = 4 * block_in_bytes + 6 * block_f32_bytes + (2 << 20)
    vmem_limit = int(min(vmem_cap_limit, max(32 << 20, need)))

    kernel = functools.partial(_smooth_loss_kernel,
                               alpha=float(alpha), beta=float(beta))

    partials = pl.pallas_call(
        kernel,
        out_shape=jax.ShapeDtypeStruct((n_blocks, 8, 128), jnp.float32),
        grid_spec=pltpu.PrefetchScalarGridSpec(
            num_scalar_prefetch=0,
            grid=(n_blocks,),
            in_specs=[
                pl.BlockSpec((k, h, w), lambda g: (g, 0, 0)),
                pl.BlockSpec((k, h, w), lambda g: (g, 0, 0)),
            ],
            out_specs=pl.BlockSpec((1, 8, 128), lambda g: (g, 0, 0)),
        ),
        compiler_params=pltpu.CompilerParams(
            dimension_semantics=("parallel",),   # independent per-block partial sums
            vmem_limit_bytes=vmem_limit,
        ),
    )(decoded, gt)

    # Tiny final reduction over per-block partials (lets v7x run both TensorCores).
    return jnp.sum(partials[:, 0, 0])


def smooth_loss_ref(decoded, gt, alpha=1.0, beta=1.0):
    """Pure-JAX reference mirroring the PyTorch module."""
    dec = decoded.astype(jnp.float32)
    g = gt.astype(jnp.float32)
    loss_mse = jnp.sum((dec - g) ** 2)
    diff1 = jnp.abs(dec[:, :-1, :] - dec[:, 1:, :])
    diff2 = jnp.abs(dec[:, :, :-1] - dec[:, :, 1:])
    return loss_mse + (jnp.sum(diff1) + jnp.sum(diff2) * alpha) * beta


if __name__ == "__main__":
    key = jax.random.PRNGKey(0)
    k1, k2 = jax.random.split(key)

    B, H, W = 6, 16, 256
    decoded = jax.random.normal(k1, (B, H, W), dtype=jnp.float32)
    GT = jax.random.normal(k2, (B, H, W), dtype=jnp.float32)
    alpha, beta = 0.7, 1.3

    # Defaults give k=3 images per block -> grid=(2,), exercising the multi-block
    # "parallel" path on the dual-TensorCore parts.
    total = smooth_loss(decoded, GT, alpha=alpha, beta=beta)
    total = jax.block_until_ready(total)

    ref = smooth_loss_ref(decoded, GT, alpha=alpha, beta=beta)
    assert jnp.allclose(total, ref, rtol=2e-4, atol=1e-2), (total, ref)

    print("KERNEL_OK")
</pallas_src>

<mosaic_0001>
module attributes {stable_mosaic.version = 11 : i64} {
  func.func @_smooth_loss_kernel(%arg0: i32, %arg1: memref<3x16x256xf32, #tpu.memory_space<vmem>>, %arg2: memref<3x16x256xf32, #tpu.memory_space<vmem>>, %arg3: memref<1x8x128xf32, #tpu.memory_space<vmem>>) attributes {dimension_semantics = [#tpu.dimension_semantics<parallel>], iteration_bounds = array<i64: 2>, scalar_prefetch = 0 : i64, scratch_operands = 0 : i64, tpu.core_type = #tpu.core_type<tc>, window_params = [{transform_indices = @transform_0, window_bounds = array<i64: 3, 16, 256>}, {transform_indices = @transform_1, window_bounds = array<i64: 3, 16, 256>}, {transform_indices = @transform_2, window_bounds = array<i64: 1, 8, 128>}]} {
    %c0 = arith.constant 0 : index
    %c0_0 = arith.constant 0 : index
    %c0_1 = arith.constant 0 : index
    %0 = vector.load %arg1[%c0, %c0_0, %c0_1] : memref<3x16x256xf32, #tpu.memory_space<vmem>>, vector<3x16x256xf32>
    %c0_2 = arith.constant 0 : index
    %c0_3 = arith.constant 0 : index
    %c0_4 = arith.constant 0 : index
    %1 = vector.load %arg2[%c0_2, %c0_3, %c0_4] : memref<3x16x256xf32, #tpu.memory_space<vmem>>, vector<3x16x256xf32>
    %2 = arith.subf %0, %1 : vector<3x16x256xf32>
    %3 = arith.mulf %2, %2 : vector<3x16x256xf32>
    %c15_i32 = arith.constant 15 : i32
    %4 = tpu.dynamic_rotate %0 by %c15_i32 dim 1 : vector<3x16x256xf32>, i32 -> vector<3x16x256xf32>
    %5 = tpu.iota {dimensions = array<i32: 1>} : vector<3x16x256xi32>
    %c15_i32_5 = arith.constant 15 : i32
    %6 = vector.broadcast %c15_i32_5 : i32 to vector<3x16x256xi32>
    %7 = arith.cmpi slt, %5, %6 : vector<3x16x256xi32>
    %8 = arith.subf %0, %4 : vector<3x16x256xf32>
    %9 = math.absf %8 : vector<3x16x256xf32>
    %cst = arith.constant 0.000000e+00 : f32
    %10 = vector.broadcast %cst : f32 to vector<3x16x256xf32>
    %11 = arith.select %7, %9, %10 : vector<3x16x256xi1>, vector<3x16x256xf32>
    %cst_6 = arith.constant 1.300000e+00 : f32
    %12 = vector.broadcast %cst_6 : f32 to vector<3x16x256xf32>
    %13 = arith.mulf %11, %12 : vector<3x16x256xf32>
    %14 = arith.addf %3, %13 : vector<3x16x256xf32>
    %c255_i32 = arith.constant 255 : i32
    %15 = tpu.dynamic_rotate %0 by %c255_i32 dim 2 : vector<3x16x256xf32>, i32 -> vector<3x16x256xf32>
    %16 = tpu.iota {dimensions = array<i32: 2>} : vector<3x16x256xi32>
    %c255_i32_7 = arith.constant 255 : i32
    %17 = vector.broadcast %c255_i32_7 : i32 to vector<3x16x256xi32>
    %18 = arith.cmpi slt, %16, %17 : vector<3x16x256xi32>
    %19 = arith.subf %0, %15 : vector<3x16x256xf32>
    %20 = math.absf %19 : vector<3x16x256xf32>
    %cst_8 = arith.constant 0.000000e+00 : f32
    %21 = vector.broadcast %cst_8 : f32 to vector<3x16x256xf32>
    %22 = arith.select %18, %20, %21 : vector<3x16x256xi1>, vector<3x16x256xf32>
    %cst_9 = arith.constant 9.100000e-01 : f32
    %23 = vector.broadcast %cst_9 : f32 to vector<3x16x256xf32>
    %24 = arith.mulf %22, %23 : vector<3x16x256xf32>
    %25 = arith.addf %14, %24 : vector<3x16x256xf32>
    %26 = vector.shape_cast %25 : vector<3x16x256xf32> to vector<1x3x16x256xf32>
    %cst_10 = arith.constant dense<0.000000e+00> : vector<1xf32>
    %27 = vector.multi_reduction <add>, %26, %cst_10 [1, 2, 3] : vector<1x3x16x256xf32> to vector<1xf32>
    %28 = vector.shape_cast %27 : vector<1xf32> to vector<1x1x1x1xf32>
    %29 = vector.extract %28[0, 0, 0, 0] : f32 from vector<1x1x1x1xf32>
    %30 = vector.broadcast %29 : f32 to vector<1x8x128xf32>
    %c0_11 = arith.constant 0 : index
    %c0_12 = arith.constant 0 : index
    %c0_13 = arith.constant 0 : index
    %31 = vector.load %arg3[%c0_11, %c0_12, %c0_13] : memref<1x8x128xf32, #tpu.memory_space<vmem>>, vector<1x8x128xf32>
    tpu.vector_store %arg3[%c0_11, %c0_12, %c0_13], %30 {strides = array<i32>} : memref<1x8x128xf32, #tpu.memory_space<vmem>>, vector<1x8x128xf32>,
    return
  }
  func.func @transform_0(%arg0: i32) -> (i32, i32, i32) {
    %c0_i32 = arith.constant 0 : i32
    %c0_i32_0 = arith.constant 0 : i32
    %c0_i32_1 = arith.constant 0 : i32
    return %arg0, %c0_i32, %c0_i32_0 : i32, i32, i32
  }
  func.func @transform_1(%arg0: i32) -> (i32, i32, i32) {
    %c0_i32 = arith.constant 0 : i32
    %c0_i32_0 = arith.constant 0 : i32
    %c0_i32_1 = arith.constant 0 : i32
    return %arg0, %c0_i32, %c0_i32_0 : i32, i32, i32
  }
  func.func @transform_2(%arg0: i32) -> (i32, i32, i32) {
    %c0_i32 = arith.constant 0 : i32
    %c0_i32_0 = arith.constant 0 : i32
    %c0_i32_1 = arith.constant 0 : i32
    return %arg0, %c0_i32, %c0_i32_0 : i32, i32, i32
  }
}

</mosaic_0001>

<bundles_post_ra>
// kernel: tpu_custom_call.1
= control target key start
LH: loop header
LB: loop body
LE: loop exit
PB: predicated region body
PF: predicated region fallthrough
CT: control target
= control target key end

     0   :  { %7 = vsyncpa [#allocation3], 0  ;;  %s1247_s0 = inlined_call_operand.hbm [shape: f32[6,16,256], index: 0, kind: input, shape index: {}]   ;;  %s1248_s1 = inlined_call_operand.hbm [shape: f32[6,16,256], index: 1, kind: input, shape index: {}]   ;;  %s1249_s2 = inlined_call_operand.hbm [shape: f32[2,8,128], index: 2, kind: output, shape index: {}]  }
   0x1   :  { %9 = vsyncpa [#allocation3 + $0x1], 0 }
   0x2   :  { %10 = vsyncpa [#allocation6], 0 }
   0x3   :  { %12 = vsyncpa [#allocation6 + $0x1], 0 }
   0x4   :  { %13 = vsyncpa [#allocation4], 0 }
   0x5   :  { %15 = vsyncpa [#allocation4 + $0x1], 0  ;;  %s806_s9 = smov 0   ;;  %s808_s10 = smov 0  }
   0x6   :  { %s810_s11 = smov 0   ;;  %s812_s12 = smov 0  }
   0x7 LB: > { %s827_s13 = sadd.s32 4294967295, %s783_s12   ;;  %s575_s14 = sadd.s32 4294967294, %s783_s12   ;;  %s783_s12 = sphi %s812_s12, %s1264_s12   ;;  %s779_s11 = sphi %s810_s11, %s1263_s11   ;;  %s775_s10 = sphi %s808_s10, %s1262_s10   ;;  %s771_s9 = sphi %s806_s9, %s1261_s9  }
   0x8   : > { %s831_s15 = sadd.s32 1, %s783_s12   ;;  %s28_s16 = sadd.s32 1, %s779_s11 }
   0x9   : > { %s25_s17 = ssub.s32 %s783_s12, %s831_s15  ;;  %p35_p0 = scmp.ne.s32.totalorder %s779_s11, %s775_s10 }
   0xa   : > { %p26_p1 = scmp.eq.s32.totalorder %s25_s17, 0  ;;  %p36_p2 = scmp.eq.s32.totalorder %s783_s12, 0 }
   0xb   : > { %p41_p3 = scmp.ne.s32.totalorder %s775_s10, %s771_s9  ;;  %p42_p4 = scmp.eq.s32.totalorder %s827_s13, 0 }
   0xc   : > { %s843_s18 = scalar_select %p26_p1, %s779_s11, %s28_s16  }
   0xd   : > { %p37_p5 = por %p36_p2, %p35_p0  ;;  %p845_p6 = por %p42_p4, %p41_p3 }
   0xe   : > { %p91_p7 = scmp.eq.s32.totalorder %s827_s13, 1  ;;  %p97_p8 = scmp.eq.s32.totalorder %s575_s14, 1 }
   0xf   : > { %s1252_s19 = scalar_select %p845_p6, 1, 0 }
  0x10   : > { %p616_p10 = scmp.lt.s32.totalorder %s783_s12, 2  ;;  %p852_p11 = por %p91_p7, %p35_p0 }
  0x11   : > { %p856_p12 = por %p97_p8, %p41_p3  ;;  %s861_s22 = sand.u32 1, %s779_s11  }
  0x12   : > { %s1253_s20 = scalar_select %p852_p11, 1, 0 }
  0x13   : > { %s1254_s21 = scalar_select %p856_p12, 1, 0 }
  0x14   : > { %s592_s23 = smul.u32 1536, %s783_s12  ;;  %p872_p13 = pnand %p616_p10, %p37_p5 }
  0x15   : > { %s594_s24 = smul.u32 96, %s861_s22  ;;  %s118_s3 = scalar_lea.sflag [#allocation3], %s861_s22 }
  0x16   : > { %s870_s27 = scalar_lea.hbm %s1247_s0, %s592_s23  ;;  %p655_p1 = pneg %p872_p13 }
  0x17   : > { %s121_s29 = scalar_lea.vmem [#allocation2], %s594_s24  ;;  %s653_s4 = scalar_lea.hbm %s870_s27, 1536 }
  0x18   : > { %s129_s30 = sshll.u32 %s121_s29, 4  ;;  %p654_p0 = scmp.ne.s32.totalorder %s870_s27, %s653_s4  ;;  %s878_s30 = int_to_ptr.vmem [resolvable:$true] %s129_s30 }
  0x19   : > { %s658_s7 = scalar_lea.hbm %s1247_s0, 3072  ;;  %p659_p4 = scmp.lt.u32.totalorder %s870_s27, %s1247_s0 }
  0x1a   : > { %p656_p2 = pnand %p655_p1, %p654_p0  ;;  %p660_p5 = scmp.lt.u32.totalorder %s658_s7, %s653_s4 }
  0x1b   : > { %p662_p8 = scmp.lt.u32.totalorder %s653_s4, %s870_s27 }
  0x1c   : > { %p657_p3 = pneg %p656_p2  ;;  %p661_p7 = por %p660_p5, %p659_p4 }
  0x1e   : > { %p663_p10 = por %p662_p8, %p661_p7 }
  0x20   : > { %p664_p9 = pnand %p663_p10, %p657_p3 }
  0x22   : > { %667 = shalt.err (!%p664_p9)
}
  0x23   : > { %s668_s16 = scalar_lea.vmem %s878_s30, 1536  ;;  %s785_s17 = smov [#allocation2]  }
  0x24   : > { %p669_p0 = scmp.ne.s32.totalorder %s878_s30, %s668_s16  ;;  %s673_s25 = sshll.u32 %s785_s17, 4  ;;  %s674_s25 = int_to_ptr.vmem [resolvable:$false] %s673_s25 }
  0x25   : > { %s675_s26 = scalar_lea.vmem %s674_s25, 3072  ;;  %p676_p11 = scmp.lt.s32.totalorder %s878_s30, %s674_s25 }
  0x26   : > { %p671_p2 = pnand %p669_p0, %p655_p1  ;;  %p677_p4 = scmp.lt.s32.totalorder %s675_s26, %s668_s16 }
  0x28   : > { %p672_p12 = pneg %p671_p2  ;;  %p678_p5 = por %p677_p4, %p676_p11 }
  0x2a   : > { %p679_p7 = pnand %p678_p5, %p672_p12 }
  0x2c   : > { %682 = shalt.err (!%p679_p7)
}
  0x2d   : > { %s786_s29 = smov 256   ;;  %s787_s4 = smov 16  }
  0x2e   : > { %608 = dma.hbm_to_vmem [thread:$0]  (!%p872_p13), %s870_s27, 1536, %s878_s30, %s118_s3, %s786_s29, %s786_s29, %s787_s4  }
  0x2f   : > { %p582_p9 = scmp.ge.s32.totalorder %s783_s12, 1  ;;  %p159_p11 = scmp.lt.s32.totalorder %s783_s12, 3 }
  0x30   : > { %s922_s8 = scalar_lea.hbm %s1248_s1, %s592_s23  ;;  %s143_s14 = scalar_lea.vmem [#allocation5], %s594_s24 }
  0x31   : > { %p913_p12 = pnand %p582_p9, %p159_p11  ;;  %s151_s16 = sshll.u32 %s143_s14, 4  ;;  %s926_s16 = int_to_ptr.vmem [resolvable:$true] %s151_s16 }
  0x32   : > { %s140_s27 = scalar_lea.sflag [#allocation6], %s861_s22  ;;  %s683_s30 = scalar_lea.hbm %s922_s8, 1536 }
  0x33   : > { %p684_p3 = scmp.ne.s32.totalorder %s922_s8, %s683_s30  ;;  %s688_s23 = scalar_lea.hbm %s1248_s1, 3072 }
  0x34   : > { %p689_p0 = scmp.lt.u32.totalorder %s922_s8, %s1248_s1  ;;  %p690_p2 = scmp.lt.u32.totalorder %s688_s23, %s683_s30 }
  0x35   : > { %p686_p8 = pnand %p684_p3, %p655_p1  ;;  %p692_p5 = scmp.lt.u32.totalorder %s683_s30, %s922_s8 }
  0x36   : > { %p691_p4 = por %p690_p2, %p689_p0 }
  0x37   : > { %p687_p10 = pneg %p686_p8 }
  0x38   : > { %p693_p7 = por %p692_p5, %p691_p4 }
  0x3a   : > { %p694_p9 = pnand %p693_p7, %p687_p10 }
  0x3c   : > { %697 = shalt.err (!%p694_p9)
}
  0x3d   : > { %s698_s24 = scalar_lea.vmem %s926_s16, 1536  ;;  %s788_s6 = smov [#allocation5]  }
  0x3e   : > { %p699_p11 = scmp.ne.s32.totalorder %s926_s16, %s698_s24  ;;  %s703_s7 = sshll.u32 %s788_s6, 4  ;;  %s704_s7 = int_to_ptr.vmem [resolvable:$false] %s703_s7 }
  0x3f   : > { %s705_s14 = scalar_lea.vmem %s704_s7, 3072  ;;  %p706_p6 = scmp.lt.s32.totalorder %s926_s16, %s704_s7 }
  0x40   : > { %p701_p3 = pnand %p699_p11, %p655_p1  ;;  %p707_p0 = scmp.lt.s32.totalorder %s705_s14, %s698_s24 }
  0x42   : > { %p702_p8 = pneg %p701_p3  ;;  %p708_p2 = por %p707_p0, %p706_p6 }
  0x44   : > { %p709_p4 = pnand %p708_p2, %p702_p8 }
  0x46   : > { %712 = shalt.err (!%p709_p4)
}
  0x47   : > { %611 = dma.hbm_to_vmem [thread:$0]  (!%p872_p13), %s922_s8, 1536, %s926_s16, %s140_s27, %s786_s29, %s786_s29, %s787_s4  }
  0x48   : > { %163 = sbr.rel (%p913_p12) target bundleno = 454 (0x1c6), region = 28  ;;  %s960_s30 = sand.u32 (!%p913_p12), 1, %s775_s10  }
  0x49   : > { %s596_s3 = smul.u32 (!%p913_p12), 96, %s960_s30  ;;  %s166_s17 = scalar_lea.sflag (!%p913_p12), [#allocation3], %s960_s30 }
  0x4a   : > { %p1257_p6 = scmp.ne.s32.totalorder (!%p913_p12), %s1252_s19, 0 }
  0x4b   : > { %s169_s28 = scalar_lea.vmem (!%p913_p12), [#allocation2], %s596_s3 }
  0x4f   : > { %758 = dma.done.wait (%p1257_p6), %s166_s17, 1536  }
  0x50   : > { %760 = vsyncadd (%p1257_p6), %s166_s17, 4294965760  ;;  %s175_s22 = scalar_lea.sflag [#allocation6], %s960_s30  ;;  %s969_s29 = scalar_lea.vmem [#allocation5], %s596_s3 }
  0x51   : > { %762 = dma.done.wait (%p1257_p6), %s175_s22, 1536  }
  0x52   : > { %764 = vsyncadd (%p1257_p6), %s175_s22, 4294965760  ;;  %v975_v0 = vld [vmem:[%s169_s28 + $0x10] sm:$0xff]  ;;  %v977_v1 = vld [vmem:[%s169_s28] sm:$0xff]  ;;  %s789_s4 = smov 127   ;;  %v266_v12 = vlaneseq  ;;  %s583_s19 = sshll.u32 %s960_s30, 3 }
  0x53   : > { %346 = vrot.lane.b32.xlu1 %v975_v0, %s789_s4  ;;  %344 = vrot.lane.b32.xlu0 %v977_v1, %s789_s4  ;;  %v981_v2 = vld [vmem:[%s169_s28 + $0x18] sm:$0xff]  ;;  %v983_v3 = vld [vmem:[%s169_s28 + $0x8] sm:$0xff]  ;;  %v260_v14 = vrot.slane %v975_v0, 1  ;;  %v254_v15 = vrot.slane %v977_v1, 1  ;;  %s203_s5 = scalar_lea.vmem [#allocation7], %s583_s19  ;;  %s585_s16 = sshll.u32 %s827_s13, 7 }
  0x54   : > { %v987_v4 = vld [vmem:[%s169_s28 + $0x28] sm:$0xff]  ;;  %v989_v5 = vld [vmem:[%s169_s28 + $0x20] sm:$0xff]  ;;  %v993_v6 = vld [vmem:[%s169_s28 + $0x38] sm:$0xff]  ;;  %v1011_v13 = vshrl.u32 %v266_v12, 7  ;;  %v261_v16 = vrot.slane %v981_v2, 1  ;;  %v255_v17 = vrot.slane %v983_v3, 1  ;;  %s1205_s26 = scalar_lea.hbm %s1249_s2, %s585_s16 }
  0x55   : > { %v995_v7 = vld [vmem:[%s169_s28 + $0x30] sm:$0xff]  ;;  %v999_v8 = vld [vmem:[%s169_s28 + $0x48] sm:$0xff]  ;;  %v1001_v9 = vld [vmem:[%s169_s28 + $0x40] sm:$0xff]  ;;  %v257_v18 = vrot.slane %v987_v4, 1  ;;  %v256_v19 = vrot.slane %v989_v5, 1  ;;  %v263_v20 = vrot.slane %v993_v6, 1 }
  0x56   : > { %v1005_v10 = vld [vmem:[%s169_s28 + $0x58] sm:$0xff]  ;;  %v1007_v11 = vld [vmem:[%s169_s28 + $0x50] sm:$0xff]  ;;  %vm268_vm0 = vcmp.lt.s32.totalorder %v1011_v13, 7  ;;  %v262_v21 = vrot.slane %v995_v7, 1  ;;  %v258_v27 = vrot.slane %v1001_v9, 1  ;;  %v1036_v30 = vadd.s32 8, %v1011_v13 }
  0x57   : > { %358 = vrot.lane.b32.xlu1 %v981_v2, %s789_s4  ;;  %356 = vrot.lane.b32.xlu0 %v983_v3, %s789_s4  ;;  %v275_v22 = vsel %vm268_vm0, %v260_v14, %v254_v15  ;;  %v276_v23 = vsel %vm268_vm0, %v261_v16, %v255_v17  ;;  %v270_v24 = vsel %vm268_vm0, %v255_v17, %v261_v16  ;;  %v220_v28 = vld [vmem:[%s969_s29 + $0x10] sm:$0xff]  ;;  %v221_v29 = vld [vmem:[%s969_s29 + $0x18] sm:$0xff]  ;;  %v1038_v31 = vand.u32 127, %v266_v12  ;;  %s482_s8 = sshll.u32 %s203_s5, 4  ;;  %s469_s24 = scalar_lea.sflag [#allocation4], %s960_s30  ;;  %s1200_s8 = int_to_ptr.vmem [resolvable:$true] %s482_s8 }
  0x58   : > { %v278_v25 = vsel %vm268_vm0, %v263_v20, %v257_v18  ;;  %v277_v26 = vsel %vm268_vm0, %v262_v21, %v256_v19  ;;  %v286_v32 = vsub.f32 %v975_v0, %v275_v22  ;;  %v264_v33 = vrot.slane %v1007_v11, 1  ;;  %v219_v41 = vld [vmem:[%s969_s29 + $0x8] sm:$0xff]  ;;  %v218_v47 = vld [vmem:[%s969_s29] sm:$0xff]  ;;  %v225_v60 = vld [vmem:[%s969_s29 + $0x38] sm:$0xff]  ;;  %s713_s6 = scalar_lea.vmem %s1200_s8, 128  ;;  %p1258_p1 = scmp.ne.s32.totalorder %s1253_s20, 0 }
  0x59   : > { %v287_v34 = vsub.f32 %v981_v2, %v276_v23  ;;  %v269_v35 = vsel %vm268_vm0, %v254_v15, %v260_v14  ;;  %v271_v36 = vsel %vm268_vm0, %v256_v19, %v262_v21  ;;  %v285_v37 = vsub.f32 %v983_v3, %v270_v24  ;;  %v222_v54 = vld [vmem:[%s969_s29 + $0x20] sm:$0xff]  ;;  %v223_v58 = vld [vmem:[%s969_s29 + $0x28] sm:$0xff]  ;;  %v224_v12 = vld [vmem:[%s969_s29 + $0x30] sm:$0xff]  ;;  %p714_p13 = scmp.ne.s32.totalorder %s1200_s8, %s713_s6  ;;  %s790_s13 = smov [#allocation7]  }
  0x5a   : > { %v291_v38 = vsub.f32 %v993_v6, %v278_v25  ;;  %v290_v39 = vsub.f32 %v995_v7, %v277_v26  ;;  %v1051_v40 = vadd.s32 128, %v1038_v31  ;;  %v1056_v42 = vsel %vm268_vm0, %v264_v33, %v258_v27  ;;  %s717_s7 = sshll.u32 %s790_s13, 4  ;;  %s718_s7 = int_to_ptr.vmem [resolvable:$false] %s717_s7 }
  0x5b   : > { %360 = vrot.lane.b32.xlu1 %v987_v4, %s789_s4  ;;  %348 = vrot.lane.b32.xlu0 %v989_v5, %s789_s4  ;;  %v233_v43 = vsub.f32 %v981_v2, %v221_v29  ;;  %v232_v44 = vsub.f32 %v975_v0, %v220_v28  ;;  %v272_v45 = vsel %vm268_vm0, %v257_v18, %v263_v20  ;;  %vm283_vm1 = vcmp.lt.s32.totalorder %v1036_v30, 15  ;;  %v226_v28 = vld [vmem:[%s969_s29 + $0x40] sm:$0xff]  ;;  %p715_p12 = pnand %p714_p13, %p1258_p1  ;;  %s719_s14 = scalar_lea.vmem %s718_s7, 256 }
  0x5c   : > { %v298_v46 = vand.u32 2147483647, %v286_v32  ;;  %v284_v48 = vsub.f32 %v977_v1, %v269_v35  ;;  %v288_v49 = vsub.f32 %v989_v5, %v271_v36  ;;  %v259_v50 = vrot.slane %v999_v8, 1  ;;  %p720_p5 = scmp.lt.s32.totalorder %s1200_s8, %s718_s7  ;;  %p721_p7 = scmp.lt.s32.totalorder %s719_s14, %s713_s6 }
  0x5d   : > { %v265_v51 = vrot.slane %v1005_v10, 1  ;;  %v299_v52 = vand.u32 2147483647, %v287_v34  ;;  %v231_v53 = vsub.f32 %v983_v3, %v219_v41  ;;  %v303_v55 = vand.u32 2147483647, %v291_v38  ;;  %p716_p10 = pneg %p715_p12 }
  0x5e   : > { %v294_v56 = vsub.f32 %v1007_v11, %v1056_v42  ;;  %v297_v57 = vand.u32 2147483647, %v285_v37  ;;  %v289_v59 = vsub.f32 %v987_v4, %v272_v45  ;;  %v245_v61 = vmul.f32 %v233_v43, %v233_v43  ;;  %v227_v45 = vld [vmem:[%s969_s29 + $0x48] sm:$0xff]  ;;  %p722_p9 = por %p721_p7, %p720_p5 }
  0x5f   : > { %362 = vrot.lane.b32.xlu1 %v993_v6, %s789_s4  ;;  %350 = vrot.lane.b32.xlu0 %v995_v7, %s789_s4  ;;  %v244_v62 = vmul.f32 %v232_v44, %v232_v44  ;;  %v230_v63 = vsub.f32 %v977_v1, %v218_v47  ;;  %v302_v14 = vand.u32 2147483647, %v290_v39  ;;  %v310_v15 = vsel %vm283_vm1, %v298_v46, 0.0 }
  0x60   : > { %v296_v16 = vand.u32 2147483647, %v284_v48  ;;  %v234_v17 = vsub.f32 %v989_v5, %v222_v54  ;;  %v300_v18 = vand.u32 2147483647, %v288_v49  ;;  %v311_v19 = vsel %vm283_vm1, %v299_v52, 0.0  ;;  %v228_v54 = vld [vmem:[%s969_s29 + $0x50] sm:$0xff]  ;;  %p723_p11 = pnand %p722_p9, %p716_p10 }
  0x61   : > { %v243_v20 = vmul.f32 %v231_v53, %v231_v53  ;;  %v235_v21 = vsub.f32 %v987_v4, %v223_v58  ;;  %v237_v22 = vsub.f32 %v993_v6, %v225_v60  ;;  %v321_v23 = vmul.f32 1.3, %v297_v57 }
  0x62   : > { %v301_v24 = vand.u32 2147483647, %v289_v59  ;;  %v236_v25 = vsub.f32 %v995_v7, %v224_v12  ;;  %v315_v26 = vsel %vm283_vm1, %v303_v55, 0.0  ;;  %v322_v29 = vmul.f32 1.3, %v310_v15 }
  0x63   : > { %364 = vrot.lane.b32.xlu1 %v999_v8, %s789_s4  ;;  %352 = vrot.lane.b32.xlu0 %v1001_v9, %s789_s4  ;;  %v242_v32 = vmul.f32 %v230_v63, %v230_v63  ;;  %v314_v34 = vsel %vm283_vm1, %v302_v14, 0.0  ;;  %v273_v35 = vsel %vm268_vm0, %v258_v27, %v264_v33  ;;  %v323_v36 = vmul.f32 1.3, %v311_v19 }
  0x64   : > { %v320_v37 = vmul.f32 1.3, %v296_v16  ;;  %v246_v38 = vmul.f32 %v234_v17, %v234_v17  ;;  %v324_v39 = vmul.f32 1.3, %v300_v18  ;;  %v247_v41 = vmul.f32 %v235_v21, %v235_v21  ;;  %v229_v18 = vld [vmem:[%s969_s29 + $0x58] sm:$0xff] }
  0x65   : > { %v249_v42 = vmul.f32 %v237_v22, %v237_v22  ;;  %v327_v43 = vmul.f32 1.3, %v315_v26  ;;  %v238_v44 = vsub.f32 %v1001_v9, %v226_v28  ;;  %v325_v48 = vmul.f32 1.3, %v301_v24 }
  0x66   : > { %v248_v49 = vmul.f32 %v236_v25, %v236_v25  ;;  %v326_v52 = vmul.f32 1.3, %v314_v34  ;;  %v292_v53 = vsub.f32 %v1001_v9, %v273_v35  ;;  %vm370_vm2 = vcmp.lt.s32.totalorder %v1038_v31, 127 }
  0x67   : > { %366 = vrot.lane.b32.xlu1 %v1005_v10, %s789_s4  ;;  %354 = vrot.lane.b32.xlu0 %v1007_v11, %s789_s4  ;;  %vm385_vm3 = vcmp.lt.s32.totalorder %v1051_v40, 255  ;;  %v1098_v27 = vadd.f32 %v322_v29, %v244_v62  ;;  %v333_v33 = vadd.f32 %v321_v23, %v243_v20  ;;  %v1100_v55 = vadd.f32 %v323_v36, %v245_v61 }
  0x68   : > { %v332_v57 = vadd.f32 %v320_v37, %v242_v32  ;;  %v1102_v58 = vadd.f32 %v324_v39, %v246_v38  ;;  %v239_v59 = vsub.f32 %v999_v8, %v227_v45  ;;  %v1105_v60 = vadd.f32 %v327_v43, %v249_v42 }
  0x69   : > { %v1107_v63 = vmul.f32 %v238_v44, %v238_v44  ;;  %v240_v12 = vsub.f32 %v1007_v11, %v228_v54  ;;  %v306_v14 = vand.u32 2147483647, %v294_v56  ;;  %v1110_v17 = vadd.f32 %v325_v48, %v247_v41 }
  0x6a   : > { %v1112_v62 = vadd.f32 %v326_v52, %v248_v49  ;;  %v304_v61 = vand.u32 2147483647, %v292_v53  ;;  %v274_v19 = vsel %vm268_vm0, %v259_v50, %v265_v51  ;;  %v241_v28 = vsub.f32 %v1005_v10, %v229_v18 }
  0x6b   : > { %v1134_v29 = vmul.f32 %v239_v59, %v239_v59  ;;  %v1136_v32 = vmul.f32 %v240_v12, %v240_v12  ;;  %v318_v34 = vsel %vm283_vm1, %v306_v14, 0.0  ;;  %v293_v41 = vsub.f32 %v999_v8, %v274_v19 }
  0x6c   : > { %v328_v45 = vmul.f32 1.3, %v304_v61  ;;  %v253_v18 = vmul.f32 %v241_v28, %v241_v28 }
  0x6d   : > { %v305_v19 = vand.u32 2147483647, %v293_v41 }
  0xc5   : > { %v347_v46 = vpop.permute.xlu1 %346  ;;  %v345_v47 = vpop.permute.xlu0 %344 }
  0xc9   : > { %v359_v15 = vpop.permute.xlu1 %358  ;;  %v357_v16 = vpop.permute.xlu0 %356 }
  0xca   : > { %v372_v20 = vsel %vm370_vm2, %v347_v46, %v359_v15  ;;  %v378_v56 = vsel %vm370_vm2, %v359_v15, %v347_v46  ;;  %v371_v21 = vsel %vm370_vm2, %v345_v47, %v357_v16  ;;  %v377_v22 = vsel %vm370_vm2, %v357_v16, %v345_v47 }
  0xcb   : > { %v388_v23 = vsub.f32 %v975_v0, %v372_v20  ;;  %v389_v24 = vsub.f32 %v981_v2, %v378_v56  ;;  %v386_v25 = vsub.f32 %v977_v1, %v371_v21  ;;  %v387_v26 = vsub.f32 %v983_v3, %v377_v22 }
  0xcc   : > { %v280_v1 = vsel %vm268_vm0, %v265_v51, %v259_v50  ;;  %v1158_v46 = vmul.f32 1.3, %v318_v34 }
  0xcd   : > { %v400_v35 = vand.u32 2147483647, %v388_v23  ;;  %v401_v36 = vand.u32 2147483647, %v389_v24  ;;  %v398_v37 = vand.u32 2147483647, %v386_v25  ;;  %v361_v38 = vpop.permute.xlu1 %360  ;;  %v349_v0 = vpop.permute.xlu0 %348  ;;  %v295_v51 = vsub.f32 %v1005_v10, %v280_v1 }
  0xce   : > { %v399_v2 = vand.u32 2147483647, %v387_v26  ;;  %v373_v3 = vsel %vm370_vm2, %v349_v0, %v361_v38  ;;  %v379_v39 = vsel %vm370_vm2, %v361_v38, %v349_v0  ;;  %v329_v38 = vmul.f32 1.3, %v305_v19 }
  0xcf   : > { %v413_v42 = vsel %vm385_vm3, %v401_v36, 0.0  ;;  %v422_v43 = vmul.f32 0.91, %v398_v37  ;;  %v390_v44 = vsub.f32 %v989_v5, %v373_v3  ;;  %v391_v50 = vsub.f32 %v987_v4, %v379_v39 }
  0xd0   : > { %v411_v13 = vsel %vm385_vm3, %v399_v2, 0.0  ;;  %v424_v47 = vmul.f32 0.91, %v400_v35  ;;  %v425_v59 = vmul.f32 0.91, %v413_v42 }
  0xd1   : > { %v423_v48 = vmul.f32 0.91, %v411_v13  ;;  %v434_v49 = vadd.f32 %v422_v43, %v332_v57  ;;  %v402_v52 = vand.u32 2147483647, %v390_v44  ;;  %v363_v53 = vpop.permute.xlu1 %362  ;;  %v351_v54 = vpop.permute.xlu0 %350  ;;  %v403_v12 = vand.u32 2147483647, %v391_v50 }
  0xd2   : > { %v374_v5 = vsel %vm370_vm2, %v351_v54, %v363_v53  ;;  %v380_v14 = vsel %vm370_vm2, %v363_v53, %v351_v54  ;;  %v307_v20 = vand.u32 2147483647, %v295_v51  ;;  %v436_v56 = vadd.f32 %v424_v47, %v1098_v27 }
  0xd3   : > { %v435_v15 = vadd.f32 %v423_v48, %v333_v33  ;;  %v426_v4 = vmul.f32 0.91, %v402_v52  ;;  %v392_v16 = vsub.f32 %v995_v7, %v374_v5  ;;  %v393_v61 = vsub.f32 %v993_v6, %v380_v14 }
  0xd4   : > { %v415_v57 = vsel %vm385_vm3, %v403_v12, 0.0  ;;  %v437_v33 = vadd.f32 %v425_v59, %v1100_v55  ;;  %v319_v55 = vsel %vm283_vm1, %v307_v20, 0.0 }
  0xd5   : > { %v446_v21 = vadd.f32 %v435_v15, %v434_v49  ;;  %v427_v22 = vmul.f32 0.91, %v415_v57  ;;  %v404_v23 = vand.u32 2147483647, %v392_v16  ;;  %v365_v24 = vpop.permute.xlu1 %364  ;;  %v353_v25 = vpop.permute.xlu0 %352  ;;  %v405_v26 = vand.u32 2147483647, %v393_v61 }
  0xd6   : > { %v375_v7 = vsel %vm370_vm2, %v353_v25, %v365_v24  ;;  %v381_v6 = vsel %vm370_vm2, %v365_v24, %v353_v25  ;;  %v438_v28 = vadd.f32 %v426_v4, %v1102_v58  ;;  %v340_v58 = vadd.f32 %v328_v45, %v1107_v63 }
  0xd7   : > { %v447_v34 = vadd.f32 %v446_v21, %v436_v56  ;;  %v428_v35 = vmul.f32 0.91, %v404_v23  ;;  %v394_v27 = vsub.f32 %v1001_v9, %v375_v7  ;;  %v417_v36 = vsel %vm385_vm3, %v405_v26, 0.0 }
  0xd8   : > { %v395_v37 = vsub.f32 %v999_v8, %v381_v6  ;;  %v439_v0 = vadd.f32 %v427_v22, %v1110_v17  ;;  %v429_v2 = vmul.f32 0.91, %v417_v36  ;;  %v331_v51 = vmul.f32 1.3, %v319_v55 }
  0xd9   : > { %v448_v1 = vadd.f32 %v447_v34, %v437_v33  ;;  %v406_v3 = vand.u32 2147483647, %v394_v27  ;;  %v367_v39 = vpop.permute.xlu1 %366  ;;  %v355_v41 = vpop.permute.xlu0 %354  ;;  %v440_v30 = vadd.f32 %v428_v35, %v1112_v62  ;;  %v341_v63 = vadd.f32 %v329_v38, %v1134_v29 }
  0xda   : > { %v407_v42 = vand.u32 2147483647, %v395_v37  ;;  %v376_v9 = vsel %vm370_vm2, %v355_v41, %v367_v39  ;;  %v382_v8 = vsel %vm370_vm2, %v367_v39, %v355_v41  ;;  %v441_v47 = vadd.f32 %v429_v2, %v1105_v60 }
  0xdb   : > { %v449_v43 = vadd.f32 %v448_v1, %v438_v28  ;;  %v430_v44 = vmul.f32 0.91, %v406_v3  ;;  %v396_v17 = vsub.f32 %v1007_v11, %v376_v9  ;;  %v397_v50 = vsub.f32 %v1005_v10, %v382_v8 }
  0xdc   : > { %v419_v13 = vsel %vm385_vm3, %v407_v42, 0.0  ;;  %v342_v11 = vadd.f32 %v1158_v46, %v1136_v32  ;;  %v343_v59 = vadd.f32 %v331_v51, %v253_v18 }
  0xdd   : > { %v450_v45 = vadd.f32 %v449_v43, %v439_v0  ;;  %v431_v48 = vmul.f32 0.91, %v419_v13  ;;  %v408_v31 = vand.u32 2147483647, %v396_v17  ;;  %v409_v49 = vand.u32 2147483647, %v397_v50 }
  0xde   : > { %v442_v53 = vadd.f32 %v430_v44, %v340_v58 }
  0xdf   : > { %v451_v52 = vadd.f32 %v450_v45, %v440_v30  ;;  %v432_v62 = vmul.f32 0.91, %v408_v31  ;;  %v421_v54 = vsel %vm385_vm3, %v409_v49, 0.0  ;;  %v443_v12 = vadd.f32 %v431_v48, %v341_v63 }
  0xe0   : > { %v433_v10 = vmul.f32 0.91, %v421_v54 }
  0xe1   : > { %v452_v5 = vadd.f32 %v451_v52, %v441_v47  ;;  %v444_v29 = vadd.f32 %v432_v62, %v342_v11 }
  0xe2   : > { %v445_v60 = vadd.f32 %v433_v10, %v343_v59 }
  0xe3   : > { %v453_v14 = vadd.f32 %v452_v5, %v442_v53 }
  0xe5   : > { %v454_v15 = vadd.f32 %v453_v14, %v443_v12 }
  0xe7   : > { %v455_v4 = vadd.f32 %v454_v15, %v444_v29 }
  0xe9   : > { %v456_v16 = vadd.f32 %v455_v4, %v445_v60 }
  0xeb   : > { %457 = vadd.xlane.f32.xlu0 %v456_v16 }
 0x178   : > { %v458_v61 = vpop.xlane.xlu0 %457 }
 0x179   : > { %v459_v57 = vrot.slane %v458_v61, 4 }
 0x17b   : > { %v460_v32 = vadd.f32 %v459_v57, %v458_v61 }
 0x17d   : > { %v461_v46 = vrot.slane %v460_v32, 2 }
 0x17f   : > { %v462_v40 = vadd.f32 %v461_v46, %v460_v32 }
 0x181   : > { %v463_v18 = vrot.slane %v462_v40, 1 }
 0x183   : > { %v464_v19 = vadd.f32 %v463_v18, %v462_v40 }
 0x185   : > { %597 = vpush %v464_v19 }
 0x1b6   : > { %s598_s27 = spop %597 }
 0x1b7   : > { %v466_v20 = vstv %s598_s27 }
 0x1b8   : > { %467 = vst [vmem:[%s203_s5] sm:$0xff] %v466_v20 }
 0x1b9   : > { %726 = shalt.err (!%p723_p11)
}
 0x1ba   : > { %s727_s30 = scalar_lea.hbm %s1205_s26, 128  ;;  %s731_s28 = scalar_lea.hbm %s1249_s2, 256 }
 0x1bb   : > { %p728_p3 = scmp.ne.s32.totalorder %s1205_s26, %s727_s30  ;;  %p732_p2 = scmp.lt.u32.totalorder %s1205_s26, %s1249_s2 }
 0x1bc   : > { %p733_p4 = scmp.lt.u32.totalorder %s731_s28, %s727_s30  ;;  %p735_p13 = scmp.lt.u32.totalorder %s727_s30, %s1205_s26 }
 0x1bd   : > { %p729_p8 = pnand %p728_p3, %p1258_p1 }
 0x1be   : > { %p734_p6 = por %p733_p4, %p732_p2 }
 0x1bf   : > { %p730_p0 = pneg %p729_p8 }
 0x1c0   : > { %p736_p12 = por %p735_p13, %p734_p6 }
 0x1c2   : > { %p737_p10 = pnand %p736_p12, %p730_p0 }
 0x1c4   : > { %740 = shalt.err (!%p737_p10)
}
 0x1c5   : > { %603 = dma.vmem_to_hbm [thread:$0]  (%p1258_p1), %s1200_s8, 128, %s1205_s26, %s469_s24  }
 0x1c6 PF: > { %s494_s4 = sand.u32 1, %s771_s9   ;;  %p1259_p5 = scmp.ne.s32.totalorder %s1254_s21, 0 }
 0x1c7   : > { %p1260_p7 = scmp.ge.s32.totalorder %s783_s12, 2  ;;  %s495_s19 = scalar_lea.sflag [#allocation4], %s494_s4 }
 0x1c9   : > { %p613_p9 = pnand %p1260_p7, %p1259_p5 }
 0x1cb   : > { %766 = dma.done.wait (!%p613_p9), %s495_s19, 128  }
 0x1cc   : > { %768 = vsyncadd (!%p613_p9), %s495_s19, 4294967168  ;;  %p18_p11 = scmp.ge.s32.totalorder %s831_s15, 4   ;;  %s1261_s9 = smov %s775_s10 }
 0x1cd   : > { %s1262_s10 = smov %s779_s11  ;;  %s1263_s11 = smov %s843_s18 }
 0x1ce   : > { %s1264_s12 = smov %s831_s15  ;;  %20 = sbr.rel (!%p18_p11) target bundleno = 7 (0x7), region = 86 }
 0x1d5   :  { %500 = vsyncpa [#allocation3], 1 }
 0x1d6   :  { %502 = vsyncpa [#allocation3 + $0x1], 1 }
 0x1d7   :  { %503 = vsyncpa [#allocation6], 1 }
 0x1d8   :  { %505 = vsyncpa [#allocation6 + $0x1], 1 }
 0x1d9   :  { %506 = vsyncpa [#allocation4], 1 }
 0x1da   :  { %508 = vsyncpa [#allocation4 + $0x1], 1 }

</bundles_post_ra>
